<compile_context>
chip_gen: v5e
topology: v5e:2x2
jax: 0.10.0
libtpu: 0.0.40
codegen_flags: <defaults>
</compile_context>

<pallas_src>
import functools

import jax
import jax.numpy as jnp
from jax.experimental import pallas as pl
from jax.experimental.pallas import tpu as pltpu


def _dma_copy_full_kernel(x_ref, o_ref, sem):
    # Single whole-array HBM -> HBM DMA (no VMEM staging).
    cp = pltpu.make_async_copy(x_ref, o_ref, sem)
    cp.start()
    cp.wait()


def _dma_copy_chunk_kernel(chunk_rows, x_ref, o_ref, sem):
    # One leading-dim chunk per grid step: HBM -> HBM DMA of a contiguous
    # slice.  Chunks are disjoint, so the grid axis is safely "parallel"
    # (one chunk per TensorCore on v7x).
    i = pl.program_id(0)
    start = pl.multiple_of(i * chunk_rows, chunk_rows)
    cp = pltpu.make_async_copy(
        x_ref.at[pl.ds(start, chunk_rows)],
        o_ref.at[pl.ds(start, chunk_rows)],
        sem,
    )
    cp.start()
    cp.wait()


# Only split the copy when each half is at least 2 MiB; below that a single
# DMA has lower overhead and already saturates HBM bandwidth.
_SPLIT_MIN_BYTES = 4 * 1024 * 1024


def basenet_forward(x: jax.Array) -> jax.Array:
    """Identity forward of (abstract) BaseNet via a direct HBM->HBM DMA kernel.

    Works for any shape/dtype with no padding, no reshapes and no VMEM use.
    (The truly free identity is `return x`; this keeps a Pallas kernel in the
    path as required.)
    """
    total_bytes = int(x.size) * jnp.dtype(x.dtype).itemsize

    if x.ndim >= 1 and x.shape[0] % 2 == 0 and total_bytes >= _SPLIT_MIN_BYTES:
        # Large array with an even leading dim: 2 independent chunks so the
        # "parallel" grid axis can shard across v7x's two TensorCores.
        num_chunks = 2
        chunk_rows = x.shape[0] // 2
        kernel = functools.partial(_dma_copy_chunk_kernel, chunk_rows)
    else:
        # Small / oddly shaped arrays: one whole-array DMA, zero per-step
        # overhead, no ragged-tail handling needed.
        num_chunks = 1
        kernel = _dma_copy_full_kernel

    return pl.pallas_call(
        kernel,
        out_shape=jax.ShapeDtypeStruct(x.shape, x.dtype),
        grid_spec=pltpu.PrefetchScalarGridSpec(
            num_scalar_prefetch=0,
            grid=(num_chunks,),
            in_specs=[pl.BlockSpec(memory_space=pl.ANY)],   # raw HBM ref
            out_specs=pl.BlockSpec(memory_space=pl.ANY),    # raw HBM ref
            scratch_shapes=[pltpu.SemaphoreType.DMA(())],
        ),
        compiler_params=pltpu.CompilerParams(
            dimension_semantics=("parallel",),
        ),
    )(x)


if __name__ == "__main__":
    key = jax.random.PRNGKey(0)
    k_small, k_big = jax.random.split(key)

    # Small NCHW input consistent with what a BaseNet subclass would consume.
    x = jax.random.normal(k_small, (2, 4, 16, 16), dtype=jnp.float32)
    y = jax.block_until_ready(basenet_forward(x))
    assert y.shape == x.shape and y.dtype == x.dtype
    assert bool(jnp.array_equal(y, x)), "identity forward mismatch"

    # Also exercise the 2-chunk (v7x two-TensorCore) path: 4 MiB, even lead dim.
    x_big = jax.random.normal(k_big, (16, 256, 256), dtype=jnp.float32)
    y_big = jax.block_until_ready(basenet_forward(x_big))
    assert bool(jnp.array_equal(y_big, x_big)), "chunked identity mismatch"

    print("KERNEL_OK")
</pallas_src>

<mosaic_0001>
module attributes {stable_mosaic.version = 11 : i64} {
  func.func @_dma_copy_full_kernel(%arg0: i32, %arg1: memref<2x4x16x16xf32, #tpu.memory_space<any>>, %arg2: memref<2x4x16x16xf32, #tpu.memory_space<any>>, %arg3: memref<!tpu.dma_semaphore, #tpu.memory_space<semaphore_mem>>) attributes {dimension_semantics = [#tpu.dimension_semantics<parallel>], iteration_bounds = array<i64: 1>, scalar_prefetch = 0 : i64, scratch_operands = 1 : i64, tpu.core_type = #tpu.core_type<tc>, window_params = [{}, {}]} {
    tpu.enqueue_dma source(%arg1 : memref<2x4x16x16xf32, #tpu.memory_space<any>>) target(%arg2 : memref<2x4x16x16xf32, #tpu.memory_space<any>>) target_semaphore(%arg3 : memref<!tpu.dma_semaphore, #tpu.memory_space<semaphore_mem>>)
    tpu.wait_dma2 semaphore(%arg3 : memref<!tpu.dma_semaphore, #tpu.memory_space<semaphore_mem>>) src(%arg1 : memref<2x4x16x16xf32, #tpu.memory_space<any>>) dst(%arg2 : memref<2x4x16x16xf32, #tpu.memory_space<any>>)
    return
  }
}

</mosaic_0001>

<bundles_post_ra>
// kernel: tpu_custom_call.1
= control target key start
LH: loop header
LB: loop body
LE: loop exit
PB: predicated region body
PF: predicated region fallthrough
CT: control target
= control target key end

     0   :  { %s34_s12 = smov [#allocation2]   ;;  %s35_s13 = smov [#allocation3]   ;;  %s53_s0 = inlined_call_operand.hbm [shape: f32[2,4,16,16], index: 0, kind: input, shape index: {}]   ;;  %s54_s1 = inlined_call_operand.hbm [shape: f32[2,4,16,16], index: 1, kind: output, shape index: {}]  }
   0x1   :  { %s10_s8 = sshll.u32 %s53_s0, 4  ;;  %s12_s11 = sshll.u32 %s54_s1, 4  ;;  %s11_s8 = int_to_ptr.hbm [resolvable:$true] %s10_s8  ;;  %s13_s11 = int_to_ptr.hbm [resolvable:$true] %s12_s11 }
   0x2   :  { %s36_s14 = smov 0  }
   0x3   :  { %16 = dma.general %s11_s8, 2048, %s13_s11, %s34_s12, %s35_s13, [#allocation4], %s36_s14, 0  }
   0x4   :  { %32 = dma.done.wait [#allocation2], 2048 }
   0x5   :  { %33 = vsyncadd [#allocation2], 4294965248 }
   0x6   :  { %22 = vsyncmov [#allocation2] }
   0x9   :  { %s23_s15 = vpop.sfrf %22 }
   0xa   :  { %p28_p0 = scmp.ne.s32.totalorder %s23_s15, 0 }
   0xc   :  { %27 = shalt.err (%p28_p0)  }

</bundles_post_ra>
